<compile_context>
chip_gen: v6e
topology: v6e:2x2x1
jax: 0.10.0
libtpu: 0.0.40
codegen_flags: <defaults>
</compile_context>

<pallas_src>
import functools

import jax
import jax.numpy as jnp
import numpy as np
from jax.experimental import pallas as pl
from jax.experimental.pallas import tpu as pltpu


def _make_mha_kernel(num_heads, head_dim, tgt_len, src_len, embed_dim):
    scaling = float(head_dim) ** (-0.5)
    H, hd = num_heads, head_dim

    def kernel(q_ref, k_ref, v_ref, wqT_ref, wkT_ref, wvT_ref, woT_ref, bo_ref,
               z_ref, attn_ref):
        # q_ref: (1, tgt_len, E)   k_ref/v_ref: (1, src_len, E)
        # wqT/wkT/wvT/woT: (E, E) already transposed    bo: (1, E)
        xq = q_ref[0]                                   # [tgt, E]
        xk = k_ref[0]                                   # [src, E]
        xv = v_ref[0]                                   # [src, E]

        # F.linear: y = x @ W^T   (weights pre-transposed on host)
        q = jnp.dot(xq, wqT_ref[...], preferred_element_type=jnp.float32) * scaling
        k = jnp.dot(xk, wkT_ref[...], preferred_element_type=jnp.float32)
        v = jnp.dot(xv, wvT_ref[...], preferred_element_type=jnp.float32)

        # Split heads: [len, E] -> [H, len, hd]; batched over heads (no
        # per-head Python slices, no concatenate).
        qh = q.reshape(tgt_len, H, hd).transpose(1, 0, 2)   # [H, tgt, hd]
        kh = k.reshape(src_len, H, hd).transpose(1, 0, 2)   # [H, src, hd]
        vh = v.reshape(src_len, H, hd).transpose(1, 0, 2)   # [H, src, hd]

        # Scores: contract last dims directly (no explicit kh.T).
        s = jnp.einsum('hqd,hkd->hqk', qh, kh,
                       preferred_element_type=jnp.float32)  # [H, tgt, src]
        s = s - jnp.max(s, axis=-1, keepdims=True)
        p = jnp.exp(s)
        p = p * pl.reciprocal(jnp.sum(p, axis=-1, keepdims=True), approx=True)

        o = jnp.einsum('hqk,hkd->hqd', p, vh,
                       preferred_element_type=jnp.float32)  # [H, tgt, hd]
        o = o.transpose(1, 0, 2).reshape(tgt_len, embed_dim)  # [tgt, E]

        z = jnp.dot(o, woT_ref[...],
                    preferred_element_type=jnp.float32) + bo_ref[0]  # [tgt, E]

        z_ref[0] = z.astype(z_ref.dtype)
        attn_ref[0] = (jnp.sum(p, axis=0) * (1.0 / num_heads)).astype(attn_ref.dtype)

    return kernel


def my_multihead_attention(query, key, value, params, num_heads):
    """query: [tgt_len, bsz, E]; key/value: [src_len, bsz, E].
    Returns (attn_output [tgt_len, bsz, E], attn_weights_avg [bsz, tgt_len, src_len]).
    attn_mask / key_padding_mask / dropout are not supported (eval-mode path).
    """
    wq, wk, wv, wo, bo = params
    tgt_len, bsz, embed_dim = query.shape
    src_len = key.shape[0]
    head_dim = embed_dim // num_heads

    # batch-first for the kernel
    q_bf = jnp.transpose(query, (1, 0, 2))   # [bsz, tgt, E]
    k_bf = jnp.transpose(key, (1, 0, 2))     # [bsz, src, E]
    v_bf = jnp.transpose(value, (1, 0, 2))   # [bsz, src, E]

    # Pre-transpose weights on the host (x @ W^T == x @ WT); grid-invariant.
    wqT = jnp.transpose(wq)
    wkT = jnp.transpose(wk)
    wvT = jnp.transpose(wv)
    woT = jnp.transpose(wo)
    bo2 = bo.reshape(1, embed_dim)

    kernel = _make_mha_kernel(num_heads, head_dim, tgt_len, src_len, embed_dim)

    full2d = lambda b: (0, 0)
    z_bf, attn_avg = pl.pallas_call(
        kernel,
        out_shape=(
            jax.ShapeDtypeStruct((bsz, tgt_len, embed_dim), query.dtype),
            jax.ShapeDtypeStruct((bsz, tgt_len, src_len), jnp.float32),
        ),
        grid_spec=pltpu.PrefetchScalarGridSpec(
            num_scalar_prefetch=0,
            grid=(bsz,),
            in_specs=[
                pl.BlockSpec((1, tgt_len, embed_dim), lambda b: (b, 0, 0)),
                pl.BlockSpec((1, src_len, embed_dim), lambda b: (b, 0, 0)),
                pl.BlockSpec((1, src_len, embed_dim), lambda b: (b, 0, 0)),
                pl.BlockSpec((embed_dim, embed_dim), full2d),
                pl.BlockSpec((embed_dim, embed_dim), full2d),
                pl.BlockSpec((embed_dim, embed_dim), full2d),
                pl.BlockSpec((embed_dim, embed_dim), full2d),
                pl.BlockSpec((1, embed_dim), full2d),
            ],
            out_specs=[
                pl.BlockSpec((1, tgt_len, embed_dim), lambda b: (b, 0, 0)),
                pl.BlockSpec((1, tgt_len, src_len), lambda b: (b, 0, 0)),
            ],
        ),
        compiler_params=pltpu.CompilerParams(
            dimension_semantics=("parallel",)),
    )(q_bf, k_bf, v_bf, wqT, wkT, wvT, woT, bo2)

    attn_output = jnp.transpose(z_bf, (1, 0, 2))  # back to [tgt, bsz, E]
    return attn_output, attn_avg


def _reference(query, key, value, params, num_heads):
    """Pure-JAX mirror of the PyTorch multi_head_attention_forward (no masks)."""
    wq, wk, wv, wo, bo = params
    tgt_len, bsz, embed_dim = query.shape
    src_len = key.shape[0]
    head_dim = embed_dim // num_heads
    scaling = float(head_dim) ** (-0.5)

    q = query @ wq.T * scaling
    k = key @ wk.T
    v = value @ wv.T
    q = q.reshape(tgt_len, bsz * num_heads, head_dim).transpose(1, 0, 2)
    k = k.reshape(src_len, bsz * num_heads, head_dim).transpose(1, 0, 2)
    v = v.reshape(src_len, bsz * num_heads, head_dim).transpose(1, 0, 2)
    w = jnp.einsum("bqd,bkd->bqk", q, k)
    w = jax.nn.softmax(w, axis=-1)
    o = jnp.einsum("bqk,bkd->bqd", w, v)
    o = o.transpose(1, 0, 2).reshape(tgt_len, bsz, embed_dim)
    z = o @ wo.T + bo
    w_avg = w.reshape(bsz, num_heads, tgt_len, src_len).sum(axis=1) / num_heads
    return z, w_avg


if __name__ == "__main__":
    # small shapes: embed_dim=32, num_heads=4 -> head_dim=8, tgt=src=8, batch=2
    embed_dim, num_heads = 32, 4
    tgt_len, src_len, bsz = 8, 8, 2

    key0 = jax.random.PRNGKey(0)
    k_q, k_k, k_v, k_wq, k_wk, k_wv, k_wo, k_bo = jax.random.split(key0, 8)

    query = jax.random.normal(k_q, (tgt_len, bsz, embed_dim), jnp.float32)
    key_in = jax.random.normal(k_k, (src_len, bsz, embed_dim), jnp.float32)
    value = jax.random.normal(k_v, (src_len, bsz, embed_dim), jnp.float32)

    scale = 1.0 / np.sqrt(embed_dim)
    wq = jax.random.normal(k_wq, (embed_dim, embed_dim), jnp.float32) * scale
    wk = jax.random.normal(k_wk, (embed_dim, embed_dim), jnp.float32) * scale
    wv = jax.random.normal(k_wv, (embed_dim, embed_dim), jnp.float32) * scale
    wo = jax.random.normal(k_wo, (embed_dim, embed_dim), jnp.float32) * scale
    bo = jax.random.normal(k_bo, (embed_dim,), jnp.float32) * scale
    params = (wq, wk, wv, wo, bo)

    fn = jax.jit(functools.partial(my_multihead_attention, num_heads=num_heads))
    z, attn = fn(query, key_in, value, params)
    jax.block_until_ready((z, attn))

    z_ref, attn_ref = _reference(query, key_in, value, params, num_heads)
    # Tolerance 2e-3: pl.reciprocal(approx=True) in the softmax denominator is
    # an EUP approximate reciprocal (relative error ~1e-4-ish).
    np.testing.assert_allclose(np.asarray(z), np.asarray(z_ref), rtol=2e-3, atol=2e-3)
    np.testing.assert_allclose(np.asarray(attn), np.asarray(attn_ref), rtol=2e-3, atol=2e-3)

    assert z.shape == (tgt_len, bsz, embed_dim)
    assert attn.shape == (bsz, tgt_len, src_len)
    print("KERNEL_OK")
</pallas_src>

<mosaic_0001>
module attributes {stable_mosaic.version = 11 : i64} {
  func.func @kernel(%arg0: i32, %arg1: memref<1x8x32xf32, #tpu.memory_space<vmem>>, %arg2: memref<1x8x32xf32, #tpu.memory_space<vmem>>, %arg3: memref<1x8x32xf32, #tpu.memory_space<vmem>>, %arg4: memref<32x32xf32, #tpu.memory_space<vmem>>, %arg5: memref<32x32xf32, #tpu.memory_space<vmem>>, %arg6: memref<32x32xf32, #tpu.memory_space<vmem>>, %arg7: memref<32x32xf32, #tpu.memory_space<vmem>>, %arg8: memref<1x32xf32, #tpu.memory_space<vmem>>, %arg9: memref<1x8x32xf32, #tpu.memory_space<vmem>>, %arg10: memref<1x8x8xf32, #tpu.memory_space<vmem>>) attributes {dimension_semantics = [#tpu.dimension_semantics<parallel>], iteration_bounds = array<i64: 2>, scalar_prefetch = 0 : i64, scratch_operands = 0 : i64, tpu.core_type = #tpu.core_type<tc>, window_params = [{transform_indices = @transform_0, window_bounds = array<i64: 1, 8, 32>}, {transform_indices = @transform_1, window_bounds = array<i64: 1, 8, 32>}, {transform_indices = @transform_2, window_bounds = array<i64: 1, 8, 32>}, {pipeline_mode = #tpu.pipeline_mode<synchronous>, transform_indices = @transform_3, window_bounds = array<i64: 32, 32>}, {pipeline_mode = #tpu.pipeline_mode<synchronous>, transform_indices = @transform_4, window_bounds = array<i64: 32, 32>}, {pipeline_mode = #tpu.pipeline_mode<synchronous>, transform_indices = @transform_5, window_bounds = array<i64: 32, 32>}, {pipeline_mode = #tpu.pipeline_mode<synchronous>, transform_indices = @transform_6, window_bounds = array<i64: 32, 32>}, {pipeline_mode = #tpu.pipeline_mode<synchronous>, transform_indices = @transform_7, window_bounds = array<i64: 1, 32>}, {transform_indices = @transform_8, window_bounds = array<i64: 1, 8, 32>}, {transform_indices = @transform_9, window_bounds = array<i64: 1, 8, 8>}]} {
    %c0 = arith.constant 0 : index
    %c0_0 = arith.constant 0 : index
    %c0_1 = arith.constant 0 : index
    %0 = vector.load %arg1[%c0, %c0_0, %c0_1] : memref<1x8x32xf32, #tpu.memory_space<vmem>>, vector<1x8x32xf32>
    %1 = vector.shape_cast %0 : vector<1x8x32xf32> to vector<8x32xf32>
    %c0_2 = arith.constant 0 : index
    %c0_3 = arith.constant 0 : index
    %c0_4 = arith.constant 0 : index
    %2 = vector.load %arg2[%c0_2, %c0_3, %c0_4] : memref<1x8x32xf32, #tpu.memory_space<vmem>>, vector<1x8x32xf32>
    %3 = vector.shape_cast %2 : vector<1x8x32xf32> to vector<8x32xf32>
    %c0_5 = arith.constant 0 : index
    %c0_6 = arith.constant 0 : index
    %c0_7 = arith.constant 0 : index
    %4 = vector.load %arg3[%c0_5, %c0_6, %c0_7] : memref<1x8x32xf32, #tpu.memory_space<vmem>>, vector<1x8x32xf32>
    %5 = vector.shape_cast %4 : vector<1x8x32xf32> to vector<8x32xf32>
    %c0_8 = arith.constant 0 : index
    %c0_9 = arith.constant 0 : index
    %6 = vector.load %arg4[%c0_8, %c0_9] : memref<32x32xf32, #tpu.memory_space<vmem>>, vector<32x32xf32>
    %cst = arith.constant dense<0.000000e+00> : vector<8x32xf32>
    %7 = tpu.matmul %1, %6, %cst {dimension_numbers = #tpu.dot_dimension_numbers<[1], [0], [0], [1], [0, 0, 1, 1], [], []>} : vector<8x32xf32>, vector<32x32xf32>, vector<8x32xf32> -> vector<8x32xf32>
    %cst_10 = arith.constant 0.353553385 : f32
    %8 = vector.broadcast %cst_10 : f32 to vector<8x32xf32>
    %9 = arith.mulf %7, %8 : vector<8x32xf32>
    %c0_11 = arith.constant 0 : index
    %c0_12 = arith.constant 0 : index
    %10 = vector.load %arg5[%c0_11, %c0_12] : memref<32x32xf32, #tpu.memory_space<vmem>>, vector<32x32xf32>
    %cst_13 = arith.constant dense<0.000000e+00> : vector<8x32xf32>
    %11 = tpu.matmul %3, %10, %cst_13 {dimension_numbers = #tpu.dot_dimension_numbers<[1], [0], [0], [1], [0, 0, 1, 1], [], []>} : vector<8x32xf32>, vector<32x32xf32>, vector<8x32xf32> -> vector<8x32xf32>
    %c0_14 = arith.constant 0 : index
    %c0_15 = arith.constant 0 : index
    %12 = vector.load %arg6[%c0_14, %c0_15] : memref<32x32xf32, #tpu.memory_space<vmem>>, vector<32x32xf32>
    %cst_16 = arith.constant dense<0.000000e+00> : vector<8x32xf32>
    %13 = tpu.matmul %5, %12, %cst_16 {dimension_numbers = #tpu.dot_dimension_numbers<[1], [0], [0], [1], [0, 0, 1, 1], [], []>} : vector<8x32xf32>, vector<32x32xf32>, vector<8x32xf32> -> vector<8x32xf32>
    %14 = vector.shape_cast %9 : vector<8x32xf32> to vector<8x4x8xf32>
    %15 = tpu.transpose %14, [1, 0, 2] : vector<8x4x8xf32> -> vector<4x8x8xf32>
    %16 = vector.shape_cast %11 : vector<8x32xf32> to vector<8x4x8xf32>
    %17 = tpu.transpose %16, [1, 0, 2] : vector<8x4x8xf32> -> vector<4x8x8xf32>
    %18 = vector.shape_cast %13 : vector<8x32xf32> to vector<8x4x8xf32>
    %19 = tpu.transpose %18, [1, 0, 2] : vector<8x4x8xf32> -> vector<4x8x8xf32>
    "tpu.trace_start"() <{level = 10 : i32, message = "hqd,hkd->hqk"}> : () -> ()
    %cst_17 = arith.constant dense<0.000000e+00> : vector<4x8x8xf32>
    %20 = tpu.matmul %15, %17, %cst_17 {dimension_numbers = #tpu.dot_dimension_numbers<[2], [2], [1], [1], [0, 0, 0, 1, 1, 1], [0], [0]>} : vector<4x8x8xf32>, vector<4x8x8xf32>, vector<4x8x8xf32> -> vector<4x8x8xf32>
    "tpu.trace_stop"() : () -> ()
    %cst_18 = arith.constant dense<0xFF800000> : vector<4x8xf32>
    %21 = vector.multi_reduction <maximumf>, %20, %cst_18 [2] : vector<4x8x8xf32> to vector<4x8xf32>
    %22 = vector.shape_cast %21 : vector<4x8xf32> to vector<4x8x1xf32>
    %23 = vector.broadcast %22 : vector<4x8x1xf32> to vector<4x8x8xf32>
    %24 = arith.subf %20, %23 : vector<4x8x8xf32>
    %25 = math.exp %24 : vector<4x8x8xf32>
    %cst_19 = arith.constant dense<0.000000e+00> : vector<4x8xf32>
    %26 = vector.multi_reduction <add>, %25, %cst_19 [2] : vector<4x8x8xf32> to vector<4x8xf32>
    %27 = vector.shape_cast %26 : vector<4x8xf32> to vector<4x8x1xf32>
    %28 = tpu.reciprocal %27 {approx = true} : vector<4x8x1xf32> -> vector<4x8x1xf32>
    %29 = vector.broadcast %28 : vector<4x8x1xf32> to vector<4x8x8xf32>
    %30 = arith.mulf %25, %29 : vector<4x8x8xf32>
    "tpu.trace_start"() <{level = 10 : i32, message = "hqk,hkd->hqd"}> : () -> ()
    %cst_20 = arith.constant dense<0.000000e+00> : vector<4x8x8xf32>
    %31 = tpu.matmul %30, %19, %cst_20 {dimension_numbers = #tpu.dot_dimension_numbers<[2], [1], [1], [2], [0, 0, 0, 1, 1, 2], [0], [0]>} : vector<4x8x8xf32>, vector<4x8x8xf32>, vector<4x8x8xf32> -> vector<4x8x8xf32>
    "tpu.trace_stop"() : () -> ()
    %32 = tpu.transpose %31, [1, 0, 2] : vector<4x8x8xf32> -> vector<8x4x8xf32>
    %33 = vector.shape_cast %32 : vector<8x4x8xf32> to vector<8x32xf32>
    %c0_21 = arith.constant 0 : index
    %c0_22 = arith.constant 0 : index
    %34 = vector.load %arg7[%c0_21, %c0_22] : memref<32x32xf32, #tpu.memory_space<vmem>>, vector<32x32xf32>
    %cst_23 = arith.constant dense<0.000000e+00> : vector<8x32xf32>
    %35 = tpu.matmul %33, %34, %cst_23 {dimension_numbers = #tpu.dot_dimension_numbers<[1], [0], [0], [1], [0, 0, 1, 1], [], []>} : vector<8x32xf32>, vector<32x32xf32>, vector<8x32xf32> -> vector<8x32xf32>
    %c0_24 = arith.constant 0 : index
    %c0_25 = arith.constant 0 : index
    %36 = vector.load %arg8[%c0_24, %c0_25] : memref<1x32xf32, #tpu.memory_space<vmem>>, vector<1x32xf32>
    %37 = vector.shape_cast %36 : vector<1x32xf32> to vector<32xf32>
    %38 = vector.shape_cast %37 : vector<32xf32> to vector<1x32xf32>
    %39 = vector.broadcast %38 : vector<1x32xf32> to vector<8x32xf32>
    %40 = arith.addf %35, %39 : vector<8x32xf32>
    %c0_26 = arith.constant 0 : index
    %c0_27 = arith.constant 0 : index
    %c0_28 = arith.constant 0 : index
    %41 = vector.load %arg9[%c0_26, %c0_27, %c0_28] : memref<1x8x32xf32, #tpu.memory_space<vmem>>, vector<1x8x32xf32>
    %42 = vector.shape_cast %41 : vector<1x8x32xf32> to vector<8x32xf32>
    %43 = vector.shape_cast %40 : vector<8x32xf32> to vector<1x8x32xf32>
    tpu.vector_store %arg9[%c0_26, %c0_27, %c0_28], %43 {strides = array<i32>} : memref<1x8x32xf32, #tpu.memory_space<vmem>>, vector<1x8x32xf32>,
    %cst_29 = arith.constant dense<0.000000e+00> : vector<8x8xf32>
    %44 = vector.multi_reduction <add>, %30, %cst_29 [0] : vector<4x8x8xf32> to vector<8x8xf32>
    %cst_30 = arith.constant 2.500000e-01 : f32
    %45 = vector.broadcast %cst_30 : f32 to vector<8x8xf32>
    %46 = arith.mulf %44, %45 : vector<8x8xf32>
    %c0_31 = arith.constant 0 : index
    %c0_32 = arith.constant 0 : index
    %c0_33 = arith.constant 0 : index
    %47 = vector.load %arg10[%c0_31, %c0_32, %c0_33] : memref<1x8x8xf32, #tpu.memory_space<vmem>>, vector<1x8x8xf32>
    %48 = vector.shape_cast %47 : vector<1x8x8xf32> to vector<8x8xf32>
    %49 = vector.shape_cast %46 : vector<8x8xf32> to vector<1x8x8xf32>
    tpu.vector_store %arg10[%c0_31, %c0_32, %c0_33], %49 {strides = array<i32>} : memref<1x8x8xf32, #tpu.memory_space<vmem>>, vector<1x8x8xf32>,
    return
  }
  func.func @transform_0(%arg0: i32) -> (i32, i32, i32) {
    %c0_i32 = arith.constant 0 : i32
    %c0_i32_0 = arith.constant 0 : i32
    %c0_i32_1 = arith.constant 0 : i32
    return %arg0, %c0_i32, %c0_i32_0 : i32, i32, i32
  }
  func.func @transform_1(%arg0: i32) -> (i32, i32, i32) {
    %c0_i32 = arith.constant 0 : i32
    %c0_i32_0 = arith.constant 0 : i32
    %c0_i32_1 = arith.constant 0 : i32
    return %arg0, %c0_i32, %c0_i32_0 : i32, i32, i32
  }
  func.func @transform_2(%arg0: i32) -> (i32, i32, i32) {
    %c0_i32 = arith.constant 0 : i32
    %c0_i32_0 = arith.constant 0 : i32
    %c0_i32_1 = arith.constant 0 : i32
    return %arg0, %c0_i32, %c0_i32_0 : i32, i32, i32
  }
  func.func @transform_3(%arg0: i32) -> (i32, i32) {
    %c0_i32 = arith.constant 0 : i32
    %c0_i32_0 = arith.constant 0 : i32
    %c0_i32_1 = arith.constant 0 : i32
    return %c0_i32, %c0_i32_0 : i32, i32
  }
  func.func @transform_4(%arg0: i32) -> (i32, i32) {
    %c0_i32 = arith.constant 0 : i32
    %c0_i32_0 = arith.constant 0 : i32
    %c0_i32_1 = arith.constant 0 : i32
    return %c0_i32, %c0_i32_0 : i32, i32
  }
  func.func @transform_5(%arg0: i32) -> (i32, i32) {
    %c0_i32 = arith.constant 0 : i32
    %c0_i32_0 = arith.constant 0 : i32
    %c0_i32_1 = arith.constant 0 : i32
    return %c0_i32, %c0_i32_0 : i32, i32
  }
  func.func @transform_6(%arg0: i32) -> (i32, i32) {
    %c0_i32 = arith.constant 0 : i32
    %c0_i32_0 = arith.constant 0 : i32
    %c0_i32_1 = arith.constant 0 : i32
    return %c0_i32, %c0_i32_0 : i32, i32
  }
  func.func @transform_7(%arg0: i32) -> (i32, i32) {
    %c0_i32 = arith.constant 0 : i32
    %c0_i32_0 = arith.constant 0 : i32
    %c0_i32_1 = arith.constant 0 : i32
    return %c0_i32, %c0_i32_0 : i32, i32
  }
  func.func @transform_8(%arg0: i32) -> (i32, i32, i32) {
    %c0_i32 = arith.constant 0 : i32
    %c0_i32_0 = arith.constant 0 : i32
    %c0_i32_1 = arith.constant 0 : i32
    return %arg0, %c0_i32, %c0_i32_0 : i32, i32, i32
  }
  func.func @transform_9(%arg0: i32) -> (i32, i32, i32) {
    %c0_i32 = arith.constant 0 : i32
    %c0_i32_0 = arith.constant 0 : i32
    %c0_i32_1 = arith.constant 0 : i32
    return %arg0, %c0_i32, %c0_i32_0 : i32, i32, i32
  }
}

</mosaic_0001>

<bundles_post_ra>
// kernel: my_multihead_attention.1
= control target key start
LH: loop header
LB: loop body
LE: loop exit
PB: predicated region body
PF: predicated region fallthrough
CT: control target
= control target key end

     0   :  { %s2743_s0 = inlined_call_operand.vmem [shape: f32[2,8,32], index: 0, kind: input, shape index: {}]   ;;  %s2744_s1 = inlined_call_operand.vmem [shape: f32[2,8,32], index: 1, kind: input, shape index: {}]   ;;  %s2745_s2 = inlined_call_operand.vmem [shape: f32[2,8,32], index: 2, kind: input, shape index: {}]   ;;  %s2746_s3 = inlined_call_operand.vmem [shape: f32[32,32], index: 3, kind: input, shape index: {}]   ;;  %s2747_s4 = inlined_call_operand.vmem [shape: f32[32,32], index: 4, kind: input, shape index: {}]   ;;  %s2748_s5 = inlined_call_operand.vmem [shape: f32[32,32], index: 5, kind: input, shape index: {}]   ;;  %s2749_s6 = inlined_call_operand.vmem [shape: f32[32,32], index: 6, kind: input, shape index: {}]   ;;  %s2750_s7 = inlined_call_operand.vmem [shape: f32[1,32], index: 7, kind: input, shape index: {}]   ;;  %s2751_s8 = inlined_call_operand.vmem [shape: f32[2,8,32], index: 8, kind: output, shape index: {0}]   ;;  %s2752_s9 = inlined_call_operand.hbm [shape: f32[2,8,8], index: 9, kind: output, shape index: {1}]  }
   0x1   :  { %2754 = sst [smem:[#allocation5_spill]] %s2743_s0 }
   0x2   :  { %2755 = sst [smem:[#allocation6_spill]] %s2744_s1 }
   0x3   :  { %15 = vsyncpa [#allocation3], 0 }
   0x4   :  { %17 = vsyncpa [#allocation3 + $0x1], 0  ;;  %s2409_s30 = smov 0   ;;  %s2411_s10 = smov 0  }
   0x5   :  { %s2413_s11 = smov 0   ;;  %s2415_s12 = smov 0  }
   0x6 LB: > { %s2430_s13 = sadd.s32 4294967295, %s2346_s12   ;;  %s2063_s14 = sadd.s32 4294967294, %s2346_s12   ;;  %s2346_s12 = sphi %s2415_s12, %s2764_s12   ;;  %s2342_s11 = sphi %s2413_s11, %s2763_s11   ;;  %s2338_s10 = sphi %s2411_s10, %s2762_s10   ;;  %s2334_s30 = sphi %s2409_s30, %s2761_s30  }
   0x7   : > { %s2434_s15 = sadd.s32 1, %s2346_s12   ;;  %s239_s16 = sadd.s32 1, %s2342_s11 }
   0x8   : > { %s236_s17 = ssub.s32 %s2346_s12, %s2434_s15  ;;  %p249_p0 = scmp.ne.s32.totalorder %s2342_s11, %s2338_s10 }
   0x9   : > { %p237_p1 = scmp.eq.s32.totalorder %s236_s17, 0  ;;  %p250_p2 = scmp.eq.s32.totalorder %s2430_s13, 1 }
   0xa   : > { %p255_p3 = scmp.ne.s32.totalorder %s2338_s10, %s2334_s30  ;;  %p256_p4 = scmp.eq.s32.totalorder %s2063_s14, 1 }
   0xb   : > { %s2445_s18 = scalar_select %p237_p1, %s2342_s11, %s239_s16  }
   0xc   : > { %p2447_p5 = por %p250_p2, %p249_p0  ;;  %p2451_p6 = por %p256_p4, %p255_p3 }
   0xd   : > { %p2066_p7 = scmp.ge.s32.totalorder %s2346_s12, 1  ;;  %p310_p8 = scmp.lt.s32.totalorder %s2346_s12, 3 }
   0xf   : > { %p311_p9 = pnand %p2066_p7, %p310_p8 }
  0x10   : > { %p357_p10 = scmp.lt.s32.totalorder (!%p311_p9), %s2430_s13, 1  ;;  %s2758_s0 = sld [smem:[#allocation5_spill]] (!%p311_p9) }
  0x11   : > { %314 = sbr.rel (%p311_p9) target bundleno = 1422 (0x58e), region = 52  ;;  %s2759_s1 = sld [smem:[#allocation6_spill]] (!%p311_p9) }
  0x12   : > { %s2350_s21 = smov (!%p311_p9), 104   ;;  %s2351_s23 = smov (!%p311_p9), 120  }
  0x13   : > { %s2753_s24 = smov (!%p311_p9), 112   ;;  %s2355_s28 = smov (!%p311_p9), 16  }
  0x14   : > { %s2356_s14 = smov (!%p311_p9), 8  }
  0x16   : > { %v379_v0 = vld [vmem:[%s2746_s3 + $0x18] sm:$0xff]  ;;  %v2348_v2 = vmov 0.0   ;;  %v378_v3 = vld [vmem:[%s2746_s3 + $0x10] sm:$0xff]  ;;  %s358_s29 = scalar_select %p357_p10, %s2430_s13, 1  ;;  %v377_v5 = vld [vmem:[%s2746_s3 + $0x8] sm:$0xff]  ;;  %vm380_vm0 = vcmask 261120   ;;  %v624_v23 = vlaneseq }
  0x17   : > { %v458_v1 = vld [vmem:[%s2747_s4 + $0x18] sm:$0xff]  ;;  %2137 = vmatprep.subr.mxu0 %v2348_v2  ;;  %2148 = vmatprep.subr.mxu1 %v2348_v2  ;;  %v457_v4 = vld [vmem:[%s2747_s4 + $0x10] sm:$0xff]  ;;  %v456_v6 = vld [vmem:[%s2747_s4 + $0x8] sm:$0xff]  ;;  %vm2349_vm1 = vmmov 0   ;;  %v2353_v21 = vmov 1983009808  }
  0x18   : > { %2138 = vmatpush3.msra.mxu0 %v379_v0  ;;  %2149 = vmatpush3.msra.mxu1 %v458_v1  ;;  %s2481_s22 = sshll.u32 %s358_s29, 3  ;;  %v376_v7 = vld [vmem:[%s2746_s3] sm:$0xff]  ;;  %v535_v16 = vld [vmem:[%s2748_s5 + $0x18] sm:$0xff]  ;;  %v534_v17 = vld [vmem:[%s2748_s5 + $0x10] sm:$0xff]  ;;  %v622_v22 = vunpack.c.l.s4 %v2353_v21  ;;  %v2354_v24 = vmov 1934713408  }
  0x19   : > { %2139 = vmatprep.subr.mxu0 %v2348_v2  ;;  %2150 = vmatprep.subr.mxu1 %v2348_v2  ;;  %s360_s27 = scalar_lea.vmem %s2758_s0, %s2481_s22  ;;  %s364_s16 = scalar_lea.vmem %s2759_s1, %s2481_s22  ;;  %v455_v8 = vld [vmem:[%s2747_s4] sm:$0xff]  ;;  %v533_v18 = vld [vmem:[%s2748_s5 + $0x8] sm:$0xff]  ;;  %v654_v25 = vunpack.c.l.s4 %v2354_v24  ;;  %v625_v27 = vshrl.u32 %v624_v23, 7  ;;  %vm1047_vm2 = vcmask 64512   ;;  %vm1837_vm3 = vcmask 130048  }
  0x1a   : > { %2140 = vmatpush3.msra.mxu0 %v378_v3  ;;  %2151 = vmatpush3.msra.mxu1 %v457_v4  ;;  %v373_v9 = vld [vmem:[%s360_s27] sm:$0xff]  ;;  %v623_v26 = vunpack.c.0.s8 %v622_v22  ;;  %vm1839_vm4 = vcmask 195584   ;;  %s2098_s29 = sshll.u32 %s2430_s13, 7 }
  0x1b   : > { %2141 = vmatprep.subr.mxu0 %v2348_v2  ;;  %2152 = vmatprep.subr.mxu1 %v2348_v2  ;;  %v374_v10 = vld [vmem:[%s364_s16] sm:$0xff]  ;;  %v655_v30 = vunpack.c.0.s8 %v654_v25  ;;  %s2357_s16 = smov 24   ;;  %s1954_s26 = scalar_lea.hbm %s2752_s9, %s2098_s29 }
  0x1c   : > { %2142 = vmatpush3.msra.mxu0 %v377_v5  ;;  %2153 = vmatpush3.msra.mxu1 %v456_v6  ;;  %v532_v19 = vld [vmem:[%s2748_s5] sm:$0xff]  ;;  %v2547_v31 = vsub.s32 %v623_v26, %v625_v27 }
  0x1d   : > { %2143 = vmatprep.subr.mxu0 %v2348_v2  ;;  %2154 = vmatprep.subr.mxu1 %v2348_v2  ;;  %v2549_v38 = vsub.s32 %v655_v30, %v625_v27 }
  0x1e   : > { %2144 = vmatpush3.msra.mxu0 %v376_v7  ;;  %2145 = vmatprep.mubr.msk.f32.mxu0 %vm2349_vm1, %v2348_v2 }
  0x1f   : > { %2155 = vmatpush3.msra.mxu1 %v455_v8  ;;  %2156 = vmatprep.mubr.msk.f32.mxu1 %vm2349_vm1, %v2348_v2 }
  0x20   : > { %2146 = vmatmul.mubr.msk.f32.vlgmr.msra.gmra.mxu0 %vm380_vm0, %v373_v9  ;;  %2157 = vmatmul.mubr.msk.f32.vlgmr.msra.gmra.mxu1 %vm380_vm0, %v374_v10 }
  0x21   : > { %2170 = vmatprep.subr.mxu1 %v2348_v2  ;;  %2172 = vmatprep.mubr.msk.f32.mxu1 %vm2349_vm1, %v2348_v2 }
  0x22   : > { %2159 = vmatprep.subr.mxu0 %v2348_v2  ;;  %2167 = vmatprep.mubr.msk.f32.mxu0 %vm2349_vm1, %v2348_v2 }
  0x23   : > { %2160 = vmatpush3.msra.mxu0 %v535_v16 }
  0x24   : > { %2161 = vmatprep.subr.mxu0 %v2348_v2 }
  0x25   : > { %2162 = vmatpush3.msra.mxu0 %v534_v17 }
  0x26   : > { %2163 = vmatprep.subr.mxu0 %v2348_v2 }
  0x27   : > { %2164 = vmatpush3.msra.mxu0 %v533_v18 }
  0x28   : > { %2165 = vmatprep.subr.mxu0 %v2348_v2 }
  0x29   : > { %2166 = vmatpush3.msra.mxu0 %v532_v19 }
  0x2a   : > { %2190 = vmatprep.subr.mxu0 %v2348_v2 }
  0xe0   : > { %v450_v11 = vpop.f32.mrf.mxu0  ;;  %v528_v12 = vpop.f32.mrf.mxu1 }
  0xe1   : > { %v2513_v13 = vmul.f32 0.35355338, %v450_v11  ;;  %762 = vrot.lane.b32.xlu1 %v528_v12, %s2350_s21  ;;  %756 = vrot.lane.b32.xlu0 %v528_v12, %s2351_s23 }
  0xe2   : > { %v2147_v14 = vpop.f32.mrf.mxu0  ;;  %v2158_v15 = vpop.f32.mrf.mxu1 }
  0xe5   : > { %759 = vrot.lane.b32.xlu0 %v528_v12, %s2753_s24  ;;  %610 = vrot.lane.b32.xlu1 %v2513_v13, %s2351_s23 }
  0xe9   : > { %613 = vrot.lane.b32.xlu0 %v2513_v13, %s2753_s24  ;;  %616 = vrot.lane.b32.xlu1 %v2513_v13, %s2350_s21  ;;  %s368_s24 = scalar_lea.vmem %s2745_s2, %s2481_s22 }
  0xea   : > { %v375_v20 = vld [vmem:[%s368_s24] sm:$0xff] }
  0xeb   : > { %2168 = vmatmul.mubr.msk.f32.vlgmr.msra.gmra.mxu0 %vm380_vm0, %v375_v20 }
  0xec   : > { %2192 = vmatprep.mubr.msk.f32.mxu0 %vm2349_vm1, %v2348_v2 }
 0x153   : > { %v763_v28 = vpop.permute.xlu1 %762  ;;  %v757_v29 = vpop.permute.xlu0 %756 }
 0x154   : > { %v781_v32 = vcombine.low %v757_v29, %v763_v28  ;;  %v782_v33 = vcombine.high %v757_v29, %v763_v28 }
 0x156   : > { %v789_v39 = vrot.slane %v781_v32, %v2547_v31  ;;  %v796_v40 = vrot.slane %v782_v33, %v2547_v31 }
 0x157   : > { %v760_v34 = vpop.permute.xlu0 %759  ;;  %v611_v35 = vpop.permute.xlu1 %610 }
 0x158   : > { %v765_v36 = vcombine.low %v528_v12, %v760_v34  ;;  %v766_v37 = vcombine.high %v528_v12, %v760_v34 }
 0x15a   : > { %v773_v41 = vrot.slane %v765_v36, %v2547_v31  ;;  %v780_v42 = vrot.slane %v766_v37, %v2547_v31 }
 0x15b   : > { %v614_v43 = vpop.permute.xlu0 %613  ;;  %v617_v44 = vpop.permute.xlu1 %616 }
 0x15c   : > { %v797_v45 = vcombine.low %v773_v41, %v789_v39  ;;  %v798_v46 = vcombine.high %v773_v41, %v789_v39  ;;  %v813_v47 = vcombine.low %v780_v42, %v796_v40  ;;  %v814_v48 = vcombine.high %v780_v42, %v796_v40 }
 0x15d   : > { %v619_v49 = vcombine.low %v2513_v13, %v614_v43  ;;  %v620_v50 = vcombine.high %v2513_v13, %v614_v43  ;;  %v635_v51 = vcombine.low %v611_v35, %v617_v44  ;;  %v636_v52 = vcombine.high %v611_v35, %v617_v44 }
 0x15e   : > { %v805_v53 = vrot.slane %v797_v45, %v2549_v38  ;;  %v812_v54 = vrot.slane %v798_v46, %v2549_v38  ;;  %v821_v55 = vrot.slane %v813_v47, %v2549_v38  ;;  %v828_v56 = vrot.slane %v814_v48, %v2549_v38 }
 0x15f   : > { %v627_v57 = vrot.slane %v619_v49, %v2547_v31  ;;  %v634_v58 = vrot.slane %v620_v50, %v2547_v31  ;;  %v643_v59 = vrot.slane %v635_v51, %v2547_v31  ;;  %v650_v60 = vrot.slane %v636_v52, %v2547_v31 }
 0x160   : > { %v833_v61 = vcombine.low %v805_v53, %v812_v54  ;;  %v2077_v62 = vcombine.high %v805_v53, %v812_v54  ;;  %v849_v63 = vcombine.low %v821_v55, %v828_v56  ;;  %v2078_v0 = vcombine.high %v821_v55, %v828_v56 }
 0x161   : > { %v651_v1 = vcombine.low %v627_v57, %v643_v59  ;;  %v652_v3 = vcombine.high %v627_v57, %v643_v59  ;;  %v667_v4 = vcombine.low %v634_v58, %v650_v60  ;;  %v668_v5 = vcombine.high %v634_v58, %v650_v60 }
 0x162   : > { %v840_v6 = vrot.slane %v833_v61, %v2547_v31  ;;  %v848_v7 = vrot.slane %v2077_v62, %v2547_v31  ;;  %v856_v8 = vrot.slane %v849_v63, %v2547_v31  ;;  %v864_v9 = vrot.slane %v2078_v0, %v2547_v31 }
 0x163   : > { %v659_v10 = vrot.slane %v651_v1, %v2549_v38  ;;  %v666_v11 = vrot.slane %v652_v3, %v2549_v38  ;;  %v675_v12 = vrot.slane %v667_v4, %v2549_v38  ;;  %v682_v13 = vrot.slane %v668_v5, %v2549_v38 }
 0x164   : > { %v865_v14 = vcombine.low %v840_v6, %v848_v7  ;;  %v881_v15 = vcombine.low %v856_v8, %v864_v9  ;;  %v866_v29 = vcombine.high %v840_v6, %v848_v7  ;;  %v882_v30 = vcombine.high %v856_v8, %v864_v9 }
 0x165   : > { %v687_v16 = vcombine.low %v659_v10, %v666_v11  ;;  %v2075_v17 = vcombine.high %v659_v10, %v666_v11  ;;  %v703_v18 = vcombine.low %v675_v12, %v682_v13  ;;  %v2076_v19 = vcombine.high %v675_v12, %v682_v13 }
 0x166   : > { %v873_v20 = vrot.slane %v865_v14, %v2549_v38  ;;  %v889_v21 = vrot.slane %v881_v15, %v2549_v38  ;;  %v880_v39 = vrot.slane %v866_v29, %v2549_v38  ;;  %v896_v40 = vrot.slane %v882_v30, %v2549_v38 }
 0x167   : > { %v694_v22 = vrot.slane %v687_v16, %v2547_v31  ;;  %v702_v23 = vrot.slane %v2075_v17, %v2547_v31  ;;  %v710_v24 = vrot.slane %v703_v18, %v2547_v31  ;;  %v718_v25 = vrot.slane %v2076_v19, %v2547_v31 }
 0x168   : > { %v897_v26 = vcombine.low %v873_v20, %v889_v21  ;;  %v898_v37 = vcombine.high %v873_v20, %v889_v21  ;;  %v899_v44 = vcombine.low %v880_v39, %v896_v40  ;;  %v900_v46 = vcombine.high %v880_v39, %v896_v40 }
 0x169   : > { %v719_v27 = vcombine.low %v694_v22, %v702_v23  ;;  %v735_v28 = vcombine.low %v710_v24, %v718_v25  ;;  %v720_v34 = vcombine.high %v694_v22, %v702_v23  ;;  %v736_v35 = vcombine.high %v710_v24, %v718_v25 }
 0x16a   : > { %2171 = vmatpush3.xpose.msk.msra.mxu1 %vm1047_vm2, %v897_v26 }
 0x16b   : > { %2175 = vmatprep.subr.mxu1 %v2348_v2  ;;  %v727_v32 = vrot.slane %v719_v27, %v2549_v38  ;;  %v743_v33 = vrot.slane %v735_v28, %v2549_v38  ;;  %v734_v42 = vrot.slane %v720_v34, %v2549_v38  ;;  %v750_v43 = vrot.slane %v736_v35, %v2549_v38 }
 0x16d   : > { %v751_v36 = vcombine.low %v727_v32, %v743_v33  ;;  %v752_v41 = vcombine.high %v727_v32, %v743_v33  ;;  %v753_v45 = vcombine.low %v734_v42, %v750_v43  ;;  %v754_v47 = vcombine.high %v734_v42, %v750_v43 }
 0x16f   : > { %2173 = vmatmul.mubr.msk.f32.vlgmr.msra.gmra.mxu1 %vm1047_vm2, %v751_v36 }
 0x170   : > { %2176 = vmatpush3.xpose.msk.msra.mxu1 %vm1047_vm2, %v898_v37  ;;  %2177 = vmatprep.mubr.msk.f32.mxu1 %vm2349_vm1, %v2348_v2 }
 0x171   : > { %2180 = vmatprep.subr.mxu1 %v2348_v2 }
 0x173   : > { %2178 = vmatmul.mubr.msk.f32.vlgmr.msra.gmra.mxu1 %vm1047_vm2, %v752_v41 }
 0x174   : > { %2181 = vmatpush3.xpose.msk.msra.mxu1 %vm1047_vm2, %v899_v44  ;;  %2182 = vmatprep.mubr.msk.f32.mxu1 %vm2349_vm1, %v2348_v2 }
 0x175   : > { %2185 = vmatprep.subr.mxu1 %v2348_v2 }
 0x177   : > { %2183 = vmatmul.mubr.msk.f32.vlgmr.msra.gmra.mxu1 %vm1047_vm2, %v753_v45 }
 0x178   : > { %2186 = vmatpush3.xpose.msk.msra.mxu1 %vm1047_vm2, %v900_v46  ;;  %2187 = vmatprep.mubr.msk.f32.mxu1 %vm2349_vm1, %v2348_v2 }
 0x179   : > { %2195 = vmatprep.subr.mxu1 %v2348_v2 }
 0x17b   : > { %2188 = vmatmul.mubr.msk.f32.vlgmr.msra.gmra.mxu1 %vm1047_vm2, %v754_v47 }
 0x17c   : > { %2197 = vmatprep.mubr.msk.f32.mxu1 %vm2349_vm1, %v2348_v2 }
 0x1ab   : > { %v2605_v48 = vpop.f32.mrf.mxu0 }
 0x1ad   : > { %v2169_v49 = vpop.f32.mrf.mxu0 }
 0x22f   : > { %v1120_v50 = vpop.f32.mrf.mxu1 }
 0x230   : > { %v1352_v51 = vsel %vm1047_vm2, %v1120_v50, -inf }
 0x231   : > { %1353 = vmax.xlane.f32.xlu0 %v1352_v51  ;;  %v2174_v52 = vpop.f32.mrf.mxu1 }
 0x233   : > { %v1196_v53 = vpop.f32.mrf.mxu1 }
 0x234   : > { %v1355_v54 = vsel %vm1047_vm2, %v1196_v53, -inf }
 0x235   : > { %1356 = vmax.xlane.f32.xlu1 %v1355_v54  ;;  %v2179_v55 = vpop.f32.mrf.mxu1 }
 0x237   : > { %v1272_v56 = vpop.f32.mrf.mxu1 }
 0x238   : > { %v1358_v57 = vsel %vm1047_vm2, %v1272_v56, -inf }
 0x239   : > { %1359 = vmax.xlane.f32.xlu0 %v1358_v57  ;;  %v2184_v58 = vpop.f32.mrf.mxu1 }
 0x23b   : > { %v1348_v59 = vpop.f32.mrf.mxu1 }
 0x23c   : > { %v1361_v60 = vsel %vm1047_vm2, %v1348_v59, -inf }
 0x23d   : > { %1362 = vmax.xlane.f32.xlu0 %v1361_v60  ;;  %v2189_v61 = vpop.f32.mrf.mxu1 }
 0x246   : > { %902 = vrot.lane.b32.xlu1 %v2605_v48, %s2351_s23  ;;  %s2760_s23 = smov 112  }
 0x2ba   : > { %v1354_v62 = vpop.xlane.xlu0 %1353 }
 0x2bb   : > { %v1364_v63 = vsub.f32 %v1120_v50, %v1354_v62 }
 0x2bd   : > { %v1368_v0 = vmul.f32 1.442695, %v1364_v63 }
 0x2be   : > { %v1357_v1 = vpop.xlane.xlu1 %1356 }
 0x2bf   : > { %2270 = vpow2.f32 %v1368_v0  ;;  %v1365_v3 = vsub.f32 %v1196_v53, %v1357_v1 }
 0x2c1   : > { %v1370_v4 = vmul.f32 1.442695, %v1365_v3 }
 0x2c2   : > { %v1360_v5 = vpop.xlane.xlu0 %1359  ;;  %v903_v19 = vpop.permute.xlu1 %902 }
 0x2c3   : > { %2272 = vpow2.f32 %v1370_v4  ;;  %v1366_v6 = vsub.f32 %v1272_v56, %v1360_v5 }
 0x2c5   : > { %v1372_v7 = vmul.f32 1.442695, %v1366_v6 }
 0x2c6   : > { %v1363_v8 = vpop.xlane.xlu0 %1362 }
 0x2c7   : > { %2274 = vpow2.f32 %v1372_v7  ;;  %v1367_v9 = vsub.f32 %v1348_v59, %v1363_v8 }
 0x2c9   : > { %v1374_v10 = vmul.f32 1.442695, %v1367_v9 }
 0x2cb   : > { %2276 = vpow2.f32 %v1374_v10 }
 0x2cc   : > { %v2271_v11 = vpop.eup %2270 }
 0x2cd   : > { %v1376_v12 = vsel %vm1047_vm2, %v2271_v11, 0.0 }
 0x2ce   : > { %1377 = vadd.xlane.f32.xlu1 %v1376_v12 }
 0x2d0   : > { %v2273_v13 = vpop.eup %2272 }
 0x2d1   : > { %v1379_v14 = vsel %vm1047_vm2, %v2273_v13, 0.0 }
 0x2d2   : > { %1380 = vadd.xlane.f32.xlu0 %v1379_v14 }
 0x2d4   : > { %v2275_v15 = vpop.eup %2274 }
 0x2d5   : > { %v1382_v16 = vsel %vm1047_vm2, %v2275_v15, 0.0 }
 0x2d6   : > { %1383 = vadd.xlane.f32.xlu1 %v1382_v16 }
 0x2d8   : > { %v2277_v17 = vpop.eup %2276 }
 0x2d9   : > { %v1385_v18 = vsel %vm1047_vm2, %v2277_v17, 0.0 }
 0x2da   : > { %1386 = vadd.xlane.f32.xlu0 %v1385_v18 }
 0x2e7   : > { %908 = vrot.lane.b32.xlu1 %v2605_v48, %s2350_s21  ;;  %s354_s21 = sand.u32 1, %s2338_s10  }
 0x2e8   : > { %s2641_s24 = sshll.u32 %s354_s21, 3 }
 0x2e9   : > { %s356_s27 = scalar_lea.vmem [#allocation2], %s2641_s24 }
 0x2f0   : > { %905 = vrot.lane.b32.xlu0 %v2605_v48, %s2760_s23  ;;  %s1956_s23 = sshll.u32 %s356_s27, 4  ;;  %s1957_s23 = int_to_ptr.vmem [resolvable:$true] %s1956_s23 }
 0x357   : > { %v1378_v20 = vpop.xlane.xlu1 %1377 }
 0x35b   : > { %v1381_v21 = vpop.xlane.xlu0 %1380 }
 0x35c   : > { %2278 = vrcp.f32 %v1381_v21 }
 0x35d   : > { %2280 = vrcp.f32 %v1378_v20 }
 0x35f   : > { %v1384_v22 = vpop.xlane.xlu1 %1383 }
 0x360   : > { %2282 = vrcp.f32 %v1384_v22 }
 0x363   : > { %v1387_v23 = vpop.xlane.xlu0 %1386  ;;  %v909_v24 = vpop.permute.xlu1 %908 }
 0x364   : > { %2284 = vrcp.f32 %v1387_v23  ;;  %v927_v25 = vcombine.low %v903_v19, %v909_v24  ;;  %v928_v26 = vcombine.high %v903_v19, %v909_v24 }
 0x366   : > { %v935_v33 = vrot.slane %v927_v25, %v2547_v31  ;;  %v942_v34 = vrot.slane %v928_v26, %v2547_v31 }
 0x367   : > { %v906_v27 = vpop.permute.xlu0 %905 }
 0x368   : > { %v911_v28 = vcombine.low %v2605_v48, %v906_v27  ;;  %v912_v29 = vcombine.high %v2605_v48, %v906_v27 }
 0x369   : > { %v2279_v30 = vpop.eup %2278 }
 0x36a   : > { %v2281_v32 = vpop.eup %2280  ;;  %v919_v35 = vrot.slane %v911_v28, %v2547_v31  ;;  %v926_v36 = vrot.slane %v912_v29, %v2547_v31  ;;  %v1393_v37 = vmul.f32 %v2279_v30, %v2273_v13 }
 0x36b   : > { %v1392_v44 = vmul.f32 %v2281_v32, %v2271_v11 }
 0x36c   : > { %v943_v39 = vcombine.low %v919_v35, %v935_v33  ;;  %v944_v40 = vcombine.high %v919_v35, %v935_v33  ;;  %v959_v41 = vcombine.low %v926_v36, %v942_v34  ;;  %v960_v42 = vcombine.high %v926_v36, %v942_v34 }
 0x36d   : > { %v2283_v43 = vpop.eup %2282  ;;  %v1927_v50 = vsel %vm1047_vm2, %v1393_v37, 0.0  ;;  %v1926_v56 = vsel %vm1047_vm2, %v1392_v44, 0.0 }
 0x36e   : > { %v951_v45 = vrot.slane %v943_v39, %v2549_v38  ;;  %v958_v46 = vrot.slane %v944_v40, %v2549_v38  ;;  %v967_v47 = vrot.slane %v959_v41, %v2549_v38  ;;  %v974_v48 = vrot.slane %v960_v42, %v2549_v38  ;;  %v1843_v40 = vld [vmem:[%s2749_s6 + $0x10] sm:$0xff]  ;;  %v1842_v41 = vld [vmem:[%s2749_s6 + $0x8] sm:$0xff] }
 0x36f   : > { %v1394_v49 = vmul.f32 %v2283_v43, %v2275_v15  ;;  %v1928_v63 = vadd.f32 %v1927_v50, %v1926_v56  ;;  %v1841_v50 = vld [vmem:[%s2749_s6] sm:$0xff] }
 0x370   : > { %v979_v51 = vcombine.low %v951_v45, %v958_v46  ;;  %v2079_v52 = vcombine.high %v951_v45, %v958_v46  ;;  %v995_v53 = vcombine.low %v967_v47, %v974_v48  ;;  %v2080_v54 = vcombine.high %v967_v47, %v974_v48 }
 0x371   : > { %v2285_v55 = vpop.eup %2284  ;;  %v1929_v57 = vsel %vm1047_vm2, %v1394_v49, 0.0 }
 0x372   : > { %v986_v58 = vrot.slane %v979_v51, %v2547_v31  ;;  %v994_v59 = vrot.slane %v2079_v52, %v2547_v31  ;;  %v1002_v60 = vrot.slane %v995_v53, %v2547_v31  ;;  %v1010_v61 = vrot.slane %v2080_v54, %v2547_v31 }
 0x373   : > { %v1395_v62 = vmul.f32 %v2285_v55, %v2277_v17  ;;  %v1930_v5 = vadd.f32 %v1929_v57, %v1928_v63  ;;  %v1844_v17 = vld [vmem:[%s2749_s6 + $0x18] sm:$0xff] }
 0x374   : > { %v1011_v0 = vcombine.low %v986_v58, %v994_v59  ;;  %v1027_v1 = vcombine.low %v1002_v60, %v1010_v61  ;;  %v1012_v3 = vcombine.high %v986_v58, %v994_v59  ;;  %v1028_v4 = vcombine.high %v1002_v60, %v1010_v61 }
 0x375   : > { %v1931_v6 = vsel %vm1047_vm2, %v1395_v62, 0.0 }
 0x376   : > { %v1019_v7 = vrot.slane %v1011_v0, %v2549_v38  ;;  %v1035_v8 = vrot.slane %v1027_v1, %v2549_v38  ;;  %v1026_v9 = vrot.slane %v1012_v3, %v2549_v38  ;;  %v1042_v10 = vrot.slane %v1028_v4, %v2549_v38 }
 0x377   : > { %v1932_v11 = vadd.f32 %v1931_v6, %v1930_v5 }
 0x378   : > { %v1043_v12 = vcombine.low %v1019_v7, %v1035_v8  ;;  %v1044_v13 = vcombine.high %v1019_v7, %v1035_v8  ;;  %v1045_v15 = vcombine.low %v1026_v9, %v1042_v10  ;;  %v1046_v16 = vcombine.high %v1026_v9, %v1042_v10 }
 0x379   : > { %v1933_v14 = vmul.f32 0.25, %v1932_v11 }
 0x37a   : > { %2191 = vmatpush3.msra.mxu0 %v1043_v12  ;;  %2196 = vmatpush3.msra.mxu1 %v1044_v13 }
 0x37b   : > { %2193 = vmatmul.mubr.msk.f32.vlgmr.msra.gmra.mxu0 %vm1047_vm2, %v1392_v44  ;;  %2198 = vmatmul.mubr.msk.f32.vlgmr.msra.gmra.mxu1 %vm1047_vm2, %v1393_v37  ;;  %1934 = vst.msk [vmem:[%s356_s27] sm:$0xff] %vm1047_vm2, %v1933_v14 }
 0x37c   : > { %2200 = vmatprep.subr.mxu0 %v2348_v2  ;;  %2205 = vmatprep.subr.mxu1 %v2348_v2 }
 0x37d   : > { %2201 = vmatpush3.msra.mxu0 %v1045_v15  ;;  %2206 = vmatpush3.msra.mxu1 %v1046_v16 }
 0x37e   : > { %2202 = vmatprep.mubr.msk.f32.mxu0 %vm2349_vm1, %v2348_v2  ;;  %2207 = vmatprep.mubr.msk.f32.mxu1 %vm2349_vm1, %v2348_v2 }
 0x37f   : > { %2203 = vmatmul.mubr.msk.f32.vlgmr.msra.gmra.mxu0 %vm1047_vm2, %v1394_v49  ;;  %2208 = vmatmul.mubr.msk.f32.vlgmr.msra.gmra.mxu1 %vm1047_vm2, %v1395_v62 }
 0x380   : > { %2210 = vmatprep.subr.mxu0 %v2348_v2  ;;  %2218 = vmatprep.mubr.msk.f32.mxu0 %vm2349_vm1, %v2348_v2 }
 0x381   : > { %2211 = vmatpush3.msra.mxu0 %v1844_v17 }
 0x382   : > { %2212 = vmatprep.subr.mxu0 %v2348_v2 }
 0x383   : > { %2213 = vmatpush3.msra.mxu0 %v1843_v40 }
 0x384   : > { %2214 = vmatprep.subr.mxu0 %v2348_v2 }
 0x385   : > { %2215 = vmatpush3.msra.mxu0 %v1842_v41 }
 0x386   : > { %2216 = vmatprep.subr.mxu0 %v2348_v2 }
 0x387   : > { %2217 = vmatpush3.msra.mxu0 %v1841_v50 }
 0x43b   : > { %v1465_v18 = vpop.f32.mrf.mxu0  ;;  %v1538_v19 = vpop.f32.mrf.mxu1 }
 0x43d   : > { %v2194_v20 = vpop.f32.mrf.mxu0  ;;  %v2199_v21 = vpop.f32.mrf.mxu1 }
 0x43f   : > { %v1611_v22 = vpop.f32.mrf.mxu0  ;;  %v1684_v23 = vpop.f32.mrf.mxu1 }
 0x440   : > { %v1688_v24 = vcombine.low %v1465_v18, %v1611_v22  ;;  %v1689_v25 = vcombine.high %v1465_v18, %v1611_v22  ;;  %v1704_v26 = vcombine.low %v1538_v19, %v1684_v23  ;;  %v1705_v27 = vcombine.high %v1538_v19, %v1684_v23 }
 0x441   : > { %v2204_v28 = vpop.f32.mrf.mxu0  ;;  %v2209_v29 = vpop.f32.mrf.mxu1 }
 0x442   : > { %v1696_v30 = vrot.slane %v1688_v24, %v2547_v31  ;;  %v1703_v32 = vrot.slane %v1689_v25, %v2547_v31  ;;  %v1712_v33 = vrot.slane %v1704_v26, %v2547_v31  ;;  %v1719_v34 = vrot.slane %v1705_v27, %v2547_v31 }
 0x444   : > { %v1720_v35 = vcombine.low %v1696_v30, %v1712_v33  ;;  %v1721_v36 = vcombine.high %v1696_v30, %v1712_v33  ;;  %v1736_v37 = vcombine.low %v1703_v32, %v1719_v34  ;;  %v1737_v39 = vcombine.high %v1703_v32, %v1719_v34 }
 0x446   : > { %v1728_v42 = vrot.slane %v1720_v35, %v2549_v38  ;;  %v1735_v43 = vrot.slane %v1721_v36, %v2549_v38  ;;  %v1744_v44 = vrot.slane %v1736_v37, %v2549_v38  ;;  %v1751_v45 = vrot.slane %v1737_v39, %v2549_v38 }
 0x448   : > { %v1756_v46 = vcombine.low %v1728_v42, %v1735_v43  ;;  %v2093_v47 = vcombine.high %v1728_v42, %v1735_v43  ;;  %v1772_v48 = vcombine.low %v1744_v44, %v1751_v45  ;;  %v2094_v49 = vcombine.high %v1744_v44, %v1751_v45 }
 0x44a   : > { %v1763_v51 = vrot.slane %v1756_v46, %v2547_v31  ;;  %v1771_v52 = vrot.slane %v2093_v47, %v2547_v31  ;;  %v1779_v53 = vrot.slane %v1772_v48, %v2547_v31  ;;  %v1787_v54 = vrot.slane %v2094_v49, %v2547_v31 }
 0x44c   : > { %v1789_v55 = vcombine.high %v1763_v51, %v1771_v52  ;;  %v1805_v56 = vcombine.high %v1779_v53, %v1787_v54  ;;  %v1788_v57 = vcombine.low %v1763_v51, %v1771_v52  ;;  %v1804_v58 = vcombine.low %v1779_v53, %v1787_v54 }
 0x44e   : > { %v1803_v59 = vrot.slane %v1789_v55, %v2549_v38  ;;  %v1819_v2 = vrot.slane %v1805_v56, %v2549_v38  ;;  %v1796_v60 = vrot.slane %v1788_v57, %v2549_v38  ;;  %v1812_v61 = vrot.slane %v1804_v58, %v2549_v38 }
 0x450   : > { %v1822_v62 = vcombine.low %v1803_v59, %v1819_v2  ;;  %v1821_v63 = vcombine.high %v1796_v60, %v1812_v61  ;;  %v1820_v0 = vcombine.low %v1796_v60, %v1812_v61  ;;  %v1823_v31 = vcombine.high %v1803_v59, %v1819_v2 }
 0x452   : > { %1829 = vrot.lane.b32.xlu0 %v1822_v62, %s2355_s28  ;;  %1825 = vrot.lane.b32.xlu1 %v1821_v63, %s2356_s14  ;;  %s1940_s28 = scalar_lea.sflag [#allocation3], %s354_s21  ;;  %s2286_s14 = scalar_lea.vmem %s1957_s23, 128 }
 0x453   : > { %p2287_p11 = scmp.ne.s32.totalorder %s1957_s23, %s2286_s14 }
 0x455   : > { %p2288_p12 = pnand %p2287_p11, %p2447_p5 }
 0x456   : > { %1833 = vrot.lane.b32.xlu1 %v1823_v31, %s2357_s16  ;;  %s2358_s16 = smov [#allocation2]  }
 0x457   : > { %p2289_p13 = pneg %p2288_p12  ;;  %s2290_s0 = sshll.u32 %s2358_s16, 4  ;;  %s2291_s0 = int_to_ptr.vmem [resolvable:$false] %s2290_s0 }
 0x458   : > { %s2292_s1 = scalar_lea.vmem %s2291_s0, 256  ;;  %p2293_p0 = scmp.lt.s32.totalorder %s1957_s23, %s2291_s0 }
 0x459   : > { %p2294_p1 = scmp.lt.s32.totalorder %s2292_s1, %s2286_s14 }
 0x45b   : > { %p2295_p2 = por %p2294_p1, %p2293_p0 }
 0x45d   : > { %p2296_p3 = pnand %p2295_p2, %p2289_p13 }
 0x4c4   : > { %v1826_v1 = vpop.permute.xlu1 %1825  ;;  %v1830_v3 = vpop.permute.xlu0 %1829 }
 0x4c5   : > { %v1836_v4 = vsel %vm1047_vm2, %v1820_v0, %v1826_v1 }
 0x4c6   : > { %v1838_v5 = vsel %vm1837_vm3, %v1836_v4, %v1830_v3 }
 0x4c8   : > { %v1834_v38 = vpop.permute.xlu1 %1833 }
 0x4c9   : > { %v1840_v6 = vsel %vm1839_vm4, %v1838_v5, %v1834_v38 }
 0x4ca   : > { %2219 = vmatmul.mubr.msk.f32.vlgmr.msra.gmra.mxu0 %vm380_vm0, %v1840_v6 }
 0x4cb   : > { %2299 = shalt.err (!%p2296_p3)
}
 0x4cc   : > { %s2300_s13 = scalar_lea.hbm %s1954_s26, 128  ;;  %s2304_s27 = scalar_lea.hbm %s2752_s9, 256 }
 0x4cd   : > { %p2301_p4 = scmp.ne.s32.totalorder %s1954_s26, %s2300_s13  ;;  %p2305_p9 = scmp.lt.s32.totalorder %s1954_s26, %s2752_s9 }
 0x4ce   : > { %p2306_p10 = scmp.lt.s32.totalorder %s2304_s27, %s2300_s13 }
 0x4cf   : > { %p2302_p7 = pnand %p2301_p4, %p2447_p5 }
 0x4d0   : > { %p2307_p11 = por %p2306_p10, %p2305_p9 }
 0x4d1   : > { %p2303_p8 = pneg %p2302_p7 }
 0x4d3   : > { %p2308_p12 = pnand %p2307_p11, %p2303_p8 }
 0x4d5   : > { %2311 = shalt.err (!%p2308_p12)
}
 0x4d6   : > { %2221 = dma.vmem_to_hbm [thread:$0]  (%p2447_p5), %s1957_s23, 128, %s1954_s26, %s1940_s28   ;;  %v2095_v7 = vld [vmem:[%s2750_s7] ss:$0 sm:$0xff] }
 0x4d7   : > { %s372_s16 = scalar_lea.vmem %s2751_s8, %s2481_s22 }
 0x58a   : > { %v1921_v8 = vpop.f32.mrf.mxu0 }
 0x58b   : > { %v1922_v9 = vadd.f32 %v2095_v7, %v1921_v8 }
 0x58c   : > { %v2220_v10 = vpop.f32.mrf.mxu0 }
 0x58d   : > { %1925 = vst.msk [vmem:[%s372_s16] sm:$0xff] %vm380_vm0, %v1922_v9 }
 0x58e PF: > { %p2227_p13 = scmp.ge.s32.totalorder %s2346_s12, 2  ;;  %s1975_s19 = sand.u32 1, %s2334_s30  }
 0x58f   : > { %s1976_s26 = scalar_lea.sflag [#allocation3], %s1975_s19 }
 0x590   : > { %p2224_p5 = pnand %p2227_p13, %p2451_p6 }
 0x592   : > { %p2225_p0 = pneg %p2224_p5 }
 0x594   : > { %2329 = dma.done.wait (%p2225_p0), %s1976_s26, 128  }
 0x595   : > { %2331 = vsyncadd (%p2225_p0), %s1976_s26, 4294967168  ;;  %p20_p1 = scmp.ge.s32.totalorder %s2434_s15, 4   ;;  %s2761_s30 = smov %s2338_s10 }
 0x596   : > { %s2762_s10 = smov %s2342_s11  ;;  %s2763_s11 = smov %s2445_s18 }
 0x597   : > { %s2764_s12 = smov %s2434_s15  ;;  %22 = sbr.rel (!%p20_p1) target bundleno = 6 (0x6), region = 105 }
 0x59c   :  { %1981 = vsyncpa [#allocation3], 1 }
 0x59d   :  { %1983 = vsyncpa [#allocation3 + $0x1], 1 }

</bundles_post_ra>
